<compile_context>
chip_gen: v6e
topology: v6e:2x2x1
jax: 0.10.0
libtpu: 0.0.40
codegen_flags: <defaults>
</compile_context>

<pallas_src>
import functools

import jax
import jax.numpy as jnp
from jax.experimental import pallas as pl
from jax.experimental.pallas import tpu as pltpu


def _round_up(x, m):
    return (x + m - 1) // m * m


def _vmem_limit_bytes():
    # Generation-aware VMEM budget with headroom below the physical capacity
    # (64 MiB on v7x, 128 MiB on v5e/v6e).
    cap = 64 * 1024 * 1024
    try:
        cap = int(getattr(pltpu.get_tpu_info(), "vmem_capacity_bytes", cap))
    except Exception:
        pass
    return min(cap * 3 // 4, 96 * 1024 * 1024)


def _pick_spatial_tile(s, k_pad, cout_pad, vmem_limit):
    # Pick the per-sample spatial tile (lane axis) so the double-buffered working
    # set (bf16 patches in + f32 conv out in pass 1; f32 in/out in pass 2) lands
    # around a few MiB: big enough to amortize the ~0.35 us per-grid-step
    # overhead, small enough to pipeline 2-deep within the VMEM budget.
    per_lane = 2 * (k_pad * 2 + 3 * cout_pad * 4)
    budget = min(vmem_limit // 2, 8 * 1024 * 1024)
    ts = max(128, (budget // per_lane) // 128 * 128)
    return min(ts, _round_up(s, 128))


# ---------------------------------------------------------------------------
# Kernel 1: conv matmul (bf16 operands -> f32 acc) + per-tile BN partial stats.
# ---------------------------------------------------------------------------
def _conv_stats_kernel(w_ref, p_ref, conv_ref, sum_ref, ssq_ref):
    # w_ref:    (Cout_pad, K_pad)  bf16   flattened conv weight (resident)
    # p_ref:    (K_pad,   TS)      bf16   im2col patches (spatial on lanes)
    # conv_ref: (Cout_pad, TS)     f32    raw conv output tile (lane-dense store)
    # sum_ref / ssq_ref: (Cout_pad, 1) f32   per-tile partial sum / sum-of-squares
    acc = jnp.dot(w_ref[...], p_ref[...], preferred_element_type=jnp.float32)
    conv_ref[...] = acc
    # One-pass stats on the f32 accumulator (lane reduce -> XLU slot).
    sum_ref[...] = jnp.sum(acc, axis=1, keepdims=True)
    ssq_ref[...] = jnp.sum(acc * acc, axis=1, keepdims=True)


# ---------------------------------------------------------------------------
# Kernel 2: fused BN affine (pre-folded per-channel scale/shift) + ReLU.
# ---------------------------------------------------------------------------
def _bn_relu_kernel(conv_ref, scale_ref, shift_ref, o_ref):
    y = conv_ref[...] * scale_ref[...] + shift_ref[...]
    o_ref[...] = jnp.maximum(y, 0.0).astype(o_ref.dtype)


# ---------------------------------------------------------------------------
# im2col producing (N, K_pad, S_pad) bf16 patches, K ordered (Cin, kh, kw) to
# match weight.reshape(Cout, Cin*kh*kw); spatial (OH*OW) stays last (lane axis).
# ---------------------------------------------------------------------------
def _im2col(x, kh, kw, stride, padding, dilation, k_pad, s_pad):
    n, c, h, w = x.shape
    oh = (h + 2 * padding - dilation * (kh - 1) - 1) // stride + 1
    ow = (w + 2 * padding - dilation * (kw - 1) - 1) // stride + 1
    xp = jnp.pad(x, ((0, 0), (0, 0), (padding, padding), (padding, padding)))
    cols = []
    for ki in range(kh):
        for kj in range(kw):
            hs = ki * dilation
            ws = kj * dilation
            sl = xp[:, :,
                    hs:hs + stride * (oh - 1) + 1:stride,
                    ws:ws + stride * (ow - 1) + 1:stride]   # (N, Cin, OH, OW)
            cols.append(sl)
    p = jnp.stack(cols, axis=2)                  # (N, Cin, kh*kw, OH, OW)
    p = p.reshape(n, c * kh * kw, oh * ow)       # (N, K, S) -- no big transpose
    k, s = c * kh * kw, oh * ow
    return jnp.pad(p, ((0, 0), (0, k_pad - k), (0, s_pad - s)))


def basic_conv2d(x, weight, gamma, beta, *, stride=1, padding=0, dilation=1,
                 eps=1e-5, spatial_tile=None):
    """x: (N, Cin, H, W) NCHW, weight: (Cout, Cin, kH, kW). Returns NCHW f32.

    Precision contract: conv operands run on the MXU in bf16 with f32
    accumulation; BN statistics, affine and ReLU stay in f32.
    """
    n, cin, h, w = x.shape
    cout, cin_w, kh, kw = weight.shape
    assert cin == cin_w

    oh = (h + 2 * padding - dilation * (kh - 1) - 1) // stride + 1
    ow = (w + 2 * padding - dilation * (kw - 1) - 1) // stride + 1
    s = oh * ow                       # per-sample spatial size (lane axis)
    k = cin * kh * kw                 # contraction size (sublane axis)

    cout_pad = _round_up(cout, 8)     # f32 sublane granularity
    k_pad = _round_up(k, 16)          # bf16 sublane packing; K kept unsplit
    vmem_limit = _vmem_limit_bytes()
    ts = spatial_tile if spatial_tile is not None else \
        _pick_spatial_tile(s, k_pad, cout_pad, vmem_limit)
    ts = _round_up(ts, 128)
    s_pad = _round_up(s, ts)
    n_s_tiles = s_pad // ts
    n_tiles = n * n_s_tiles

    # bf16 patch matrix built directly (no f32 intermediate roundtrip).
    # TODO(synk): fuse this extraction into kernel 1 via memory_space=pl.ANY +
    # per-(kh,kw) strided DMA so the kH*kW-inflated matrix never hits HBM.
    patches = _im2col(x.astype(jnp.bfloat16), kh, kw, stride, padding,
                      dilation, k_pad, s_pad)            # (N, K_pad, S_pad) bf16
    w_mat = jnp.pad(weight.reshape(cout, k).astype(jnp.float32),
                    ((0, cout_pad - cout), (0, k_pad - k))).astype(jnp.bfloat16)

    flops1 = 2 * n * s_pad * k_pad * cout_pad
    bytes1 = (patches.size * 2 + w_mat.size * 2
              + n * cout_pad * s_pad * 4 + 2 * n_tiles * cout_pad * 4)

    conv_out, psum, pssq = pl.pallas_call(
        _conv_stats_kernel,
        out_shape=(
            jax.ShapeDtypeStruct((n, cout_pad, s_pad), jnp.float32),
            jax.ShapeDtypeStruct((n_tiles, cout_pad, 1), jnp.float32),
            jax.ShapeDtypeStruct((n_tiles, cout_pad, 1), jnp.float32),
        ),
        grid=(n, n_s_tiles),
        in_specs=[
            pl.BlockSpec((cout_pad, k_pad), lambda b, si: (0, 0)),
            pl.BlockSpec((None, k_pad, ts), lambda b, si: (b, 0, si)),
        ],
        out_specs=(
            pl.BlockSpec((None, cout_pad, ts), lambda b, si: (b, 0, si)),
            pl.BlockSpec((None, cout_pad, 1),
                         lambda b, si: (b * n_s_tiles + si, 0, 0)),
            pl.BlockSpec((None, cout_pad, 1),
                         lambda b, si: (b * n_s_tiles + si, 0, 0)),
        ),
        compiler_params=pltpu.CompilerParams(
            dimension_semantics=("parallel", "parallel"),
            vmem_limit_bytes=vmem_limit),
        cost_estimate=pl.CostEstimate(flops=flops1, transcendentals=0,
                                      bytes_accessed=bytes1),
    )(w_mat, patches)

    # Combine per-tile partial stats (tiny vectors) and fold BN affine:
    #   var   = E[x^2] - mean^2   (zero-padded columns contribute 0)
    #   scale = gamma * rsqrt(var + eps);  shift = beta - mean * scale
    # TODO(synk): Welford-style (count, mean, M2) combine if a layer ever has
    # |mean| >> std per channel (one-pass f32 variance can cancel).
    m_true = jnp.float32(n * s)
    total = jnp.sum(psum[:, :, 0], axis=0)               # (Cout_pad,)
    total_sq = jnp.sum(pssq[:, :, 0], axis=0)            # (Cout_pad,)
    mean = total / m_true
    var = jnp.maximum(total_sq / m_true - mean * mean, 0.0)
    inv = jax.lax.rsqrt(var + eps)
    gamma_p = jnp.pad(gamma.astype(jnp.float32), (0, cout_pad - cout))
    beta_p = jnp.pad(beta.astype(jnp.float32), (0, cout_pad - cout))
    scale = (gamma_p * inv).reshape(cout_pad, 1)
    shift = (beta_p - mean * gamma_p * inv).reshape(cout_pad, 1)

    flops2 = 3 * n * s_pad * cout_pad
    bytes2 = 2 * n * cout_pad * s_pad * 4 + 2 * cout_pad * 4

    out_full = pl.pallas_call(
        _bn_relu_kernel,
        out_shape=jax.ShapeDtypeStruct((n, cout_pad, s_pad), jnp.float32),
        grid=(n, n_s_tiles),
        in_specs=[
            pl.BlockSpec((None, cout_pad, ts), lambda b, si: (b, 0, si)),
            pl.BlockSpec((cout_pad, 1), lambda b, si: (0, 0)),
            pl.BlockSpec((cout_pad, 1), lambda b, si: (0, 0)),
        ],
        out_specs=pl.BlockSpec((None, cout_pad, ts), lambda b, si: (b, 0, si)),
        input_output_aliases={0: 0},      # BN/ReLU output reuses conv buffer
        compiler_params=pltpu.CompilerParams(
            dimension_semantics=("parallel", "parallel"),
            vmem_limit_bytes=vmem_limit),
        cost_estimate=pl.CostEstimate(flops=flops2, transcendentals=0,
                                      bytes_accessed=bytes2),
    )(conv_out, scale, shift)

    # (N, Cout_pad, S_pad) is already NCHW-ordered: slice pads + reshape only
    # (no relayout transpose; identity slice when cout/s are already aligned).
    return out_full[:, :cout, :s].reshape(n, cout, oh, ow)


def _reference(x, weight, gamma, beta, *, stride, padding, dilation, eps=1e-5):
    # Pure-JAX reference: bf16 conv operands + f32 accumulate (matching the
    # kernel's MXU precision contract), training-mode BN (biased var) + ReLU.
    y = jax.lax.conv_general_dilated(
        x.astype(jnp.bfloat16), weight.astype(jnp.bfloat16),
        window_strides=(stride, stride),
        padding=((padding, padding), (padding, padding)),
        rhs_dilation=(dilation, dilation),
        dimension_numbers=("NCHW", "OIHW", "NCHW"),
        preferred_element_type=jnp.float32)
    mean = jnp.mean(y, axis=(0, 2, 3), keepdims=True)
    var = jnp.mean((y - mean) ** 2, axis=(0, 2, 3), keepdims=True)
    y = (y - mean) * jax.lax.rsqrt(var + eps)
    y = y * gamma.reshape(1, -1, 1, 1) + beta.reshape(1, -1, 1, 1)
    return jnp.maximum(y, 0.0)


if __name__ == "__main__":
    # BasicConv2d(in_planes=4, out_planes=8, kernel_size=3, stride=1,
    #             padding=1, dilation=1)
    in_planes, out_planes, ksize = 4, 8, 3
    stride, padding, dilation = 1, 1, 1

    key = jax.random.PRNGKey(0)
    kx, kw_, kg, kb = jax.random.split(key, 4)
    x = jax.random.normal(kx, (2, in_planes, 16, 16), dtype=jnp.float32)
    weight = 0.1 * jax.random.normal(
        kw_, (out_planes, in_planes, ksize, ksize), dtype=jnp.float32)
    gamma = 1.0 + 0.1 * jax.random.normal(kg, (out_planes,), dtype=jnp.float32)
    beta = 0.1 * jax.random.normal(kb, (out_planes,), dtype=jnp.float32)

    # spatial_tile=128 -> 2 spatial tiles x 2 samples: exercises the tiled
    # matmul, the cross-tile stats combine and the 2-D "parallel" grid.
    run = jax.jit(functools.partial(basic_conv2d, stride=stride,
                                    padding=padding, dilation=dilation,
                                    spatial_tile=128))
    out = jax.block_until_ready(run(x, weight, gamma, beta))

    ref = _reference(x, weight, gamma, beta, stride=stride, padding=padding,
                     dilation=dilation)
    assert out.shape == (2, out_planes, 16, 16)
    err = float(jnp.max(jnp.abs(out - ref)))
    assert jnp.allclose(out, ref, rtol=1e-3, atol=1e-3), err
    print("KERNEL_OK")
</pallas_src>

<mosaic_0001>
module attributes {stable_mosaic.version = 11 : i64} {
  func.func @_conv_stats_kernel(%arg0: i32, %arg1: i32, %arg2: memref<8x48xbf16, #tpu.memory_space<vmem>>, %arg3: memref<1x48x128xbf16, #tpu.memory_space<vmem>>, %arg4: memref<1x8x128xf32, #tpu.memory_space<vmem>>, %arg5: memref<1x8x1xf32, #tpu.memory_space<vmem>>, %arg6: memref<1x8x1xf32, #tpu.memory_space<vmem>>) attributes {dimension_semantics = [#tpu.dimension_semantics<parallel>, #tpu.dimension_semantics<parallel>], iteration_bounds = array<i64: 2, 2>, scalar_prefetch = 0 : i64, scratch_operands = 0 : i64, tpu.core_type = #tpu.core_type<tc>, window_params = [{pipeline_mode = #tpu.pipeline_mode<synchronous>, transform_indices = @transform_0, window_bounds = array<i64: 8, 48>}, {transform_indices = @transform_1, window_bounds = array<i64: 1, 48, 128>}, {transform_indices = @transform_2, window_bounds = array<i64: 1, 8, 128>}, {transform_indices = @transform_3, window_bounds = array<i64: 1, 8, 1>}, {transform_indices = @transform_4, window_bounds = array<i64: 1, 8, 1>}]} {
    %c0 = arith.constant 0 : index
    %c0_0 = arith.constant 0 : index
    %0 = vector.load %arg2[%c0, %c0_0] : memref<8x48xbf16, #tpu.memory_space<vmem>>, vector<8x48xbf16>
    %c0_1 = arith.constant 0 : index
    %c0_2 = arith.constant 0 : index
    %c0_3 = arith.constant 0 : index
    %1 = vector.load %arg3[%c0_1, %c0_2, %c0_3] : memref<1x48x128xbf16, #tpu.memory_space<vmem>>, vector<1x48x128xbf16>
    %2 = vector.shape_cast %1 : vector<1x48x128xbf16> to vector<48x128xbf16>
    %cst = arith.constant dense<0.000000e+00> : vector<8x128xf32>
    %3 = tpu.matmul %0, %2, %cst {dimension_numbers = #tpu.dot_dimension_numbers<[1], [0], [0], [1], [0, 0, 1, 1], [], []>} : vector<8x48xbf16>, vector<48x128xbf16>, vector<8x128xf32> -> vector<8x128xf32>
    %c0_4 = arith.constant 0 : index
    %c0_5 = arith.constant 0 : index
    %c0_6 = arith.constant 0 : index
    %4 = vector.load %arg4[%c0_4, %c0_5, %c0_6] : memref<1x8x128xf32, #tpu.memory_space<vmem>>, vector<1x8x128xf32>
    %5 = vector.shape_cast %4 : vector<1x8x128xf32> to vector<8x128xf32>
    %6 = vector.shape_cast %3 : vector<8x128xf32> to vector<1x8x128xf32>
    tpu.vector_store %arg4[%c0_4, %c0_5, %c0_6], %6 {strides = array<i32>} : memref<1x8x128xf32, #tpu.memory_space<vmem>>, vector<1x8x128xf32>,
    %cst_7 = arith.constant dense<0.000000e+00> : vector<8xf32>
    %7 = vector.multi_reduction <add>, %3, %cst_7 [1] : vector<8x128xf32> to vector<8xf32>
    %8 = vector.shape_cast %7 : vector<8xf32> to vector<8x1xf32>
    %c0_8 = arith.constant 0 : index
    %c0_9 = arith.constant 0 : index
    %c0_10 = arith.constant 0 : index
    %9 = vector.load %arg5[%c0_8, %c0_9, %c0_10] : memref<1x8x1xf32, #tpu.memory_space<vmem>>, vector<1x8x1xf32>
    %10 = vector.shape_cast %9 : vector<1x8x1xf32> to vector<8x1xf32>
    %11 = vector.shape_cast %8 : vector<8x1xf32> to vector<1x8x1xf32>
    tpu.vector_store %arg5[%c0_8, %c0_9, %c0_10], %11 {strides = array<i32>} : memref<1x8x1xf32, #tpu.memory_space<vmem>>, vector<1x8x1xf32>,
    %12 = arith.mulf %3, %3 : vector<8x128xf32>
    %cst_11 = arith.constant dense<0.000000e+00> : vector<8xf32>
    %13 = vector.multi_reduction <add>, %12, %cst_11 [1] : vector<8x128xf32> to vector<8xf32>
    %14 = vector.shape_cast %13 : vector<8xf32> to vector<8x1xf32>
    %c0_12 = arith.constant 0 : index
    %c0_13 = arith.constant 0 : index
    %c0_14 = arith.constant 0 : index
    %15 = vector.load %arg6[%c0_12, %c0_13, %c0_14] : memref<1x8x1xf32, #tpu.memory_space<vmem>>, vector<1x8x1xf32>
    %16 = vector.shape_cast %15 : vector<1x8x1xf32> to vector<8x1xf32>
    %17 = vector.shape_cast %14 : vector<8x1xf32> to vector<1x8x1xf32>
    tpu.vector_store %arg6[%c0_12, %c0_13, %c0_14], %17 {strides = array<i32>} : memref<1x8x1xf32, #tpu.memory_space<vmem>>, vector<1x8x1xf32>,
    return
  }
  func.func @transform_0(%arg0: i32, %arg1: i32) -> (i32, i32) {
    %c0_i32 = arith.constant 0 : i32
    %c0_i32_0 = arith.constant 0 : i32
    %c0_i32_1 = arith.constant 0 : i32
    return %c0_i32, %c0_i32_0 : i32, i32
  }
  func.func @transform_1(%arg0: i32, %arg1: i32) -> (i32, i32, i32) {
    %c0_i32 = arith.constant 0 : i32
    %c0_i32_0 = arith.constant 0 : i32
    return %arg0, %c0_i32, %arg1 : i32, i32, i32
  }
  func.func @transform_2(%arg0: i32, %arg1: i32) -> (i32, i32, i32) {
    %c0_i32 = arith.constant 0 : i32
    %c0_i32_0 = arith.constant 0 : i32
    return %arg0, %c0_i32, %arg1 : i32, i32, i32
  }
  func.func @transform_3(%arg0: i32, %arg1: i32) -> (i32, i32, i32) {
    %c2_i32 = arith.constant 2 : i32
    %0 = arith.muli %arg0, %c2_i32 : i32
    %1 = arith.addi %0, %arg1 : i32
    %c0_i32 = arith.constant 0 : i32
    %c0_i32_0 = arith.constant 0 : i32
    %c0_i32_1 = arith.constant 0 : i32
    return %1, %c0_i32, %c0_i32_0 : i32, i32, i32
  }
  func.func @transform_4(%arg0: i32, %arg1: i32) -> (i32, i32, i32) {
    %c2_i32 = arith.constant 2 : i32
    %0 = arith.muli %arg0, %c2_i32 : i32
    %1 = arith.addi %0, %arg1 : i32
    %c0_i32 = arith.constant 0 : i32
    %c0_i32_0 = arith.constant 0 : i32
    %c0_i32_1 = arith.constant 0 : i32
    return %1, %c0_i32, %c0_i32_0 : i32, i32, i32
  }
}

module attributes {stable_mosaic.version = 11 : i64} {
  func.func @_bn_relu_kernel(%arg0: i32, %arg1: i32, %arg2: memref<1x8x128xf32, #tpu.memory_space<vmem>>, %arg3: memref<8x1xf32, #tpu.memory_space<vmem>>, %arg4: memref<8x1xf32, #tpu.memory_space<vmem>>, %arg5: memref<1x8x128xf32, #tpu.memory_space<vmem>>) attributes {dimension_semantics = [#tpu.dimension_semantics<parallel>, #tpu.dimension_semantics<parallel>], iteration_bounds = array<i64: 2, 2>, scalar_prefetch = 0 : i64, scratch_operands = 0 : i64, tpu.core_type = #tpu.core_type<tc>, window_params = [{transform_indices = @transform_0, window_bounds = array<i64: 1, 8, 128>}, {pipeline_mode = #tpu.pipeline_mode<synchronous>, transform_indices = @transform_1, window_bounds = array<i64: 8, 1>}, {pipeline_mode = #tpu.pipeline_mode<synchronous>, transform_indices = @transform_2, window_bounds = array<i64: 8, 1>}, {transform_indices = @transform_3, window_bounds = array<i64: 1, 8, 128>}]} {
    %c0 = arith.constant 0 : index
    %c0_0 = arith.constant 0 : index
    %c0_1 = arith.constant 0 : index
    %0 = vector.load %arg2[%c0, %c0_0, %c0_1] : memref<1x8x128xf32, #tpu.memory_space<vmem>>, vector<1x8x128xf32>
    %1 = vector.shape_cast %0 : vector<1x8x128xf32> to vector<8x128xf32>
    %c0_2 = arith.constant 0 : index
    %c0_3 = arith.constant 0 : index
    %2 = vector.load %arg3[%c0_2, %c0_3] : memref<8x1xf32, #tpu.memory_space<vmem>>, vector<8x1xf32>
    %3 = vector.broadcast %2 : vector<8x1xf32> to vector<8x128xf32>
    %4 = arith.mulf %1, %3 : vector<8x128xf32>
    %c0_4 = arith.constant 0 : index
    %c0_5 = arith.constant 0 : index
    %5 = vector.load %arg4[%c0_4, %c0_5] : memref<8x1xf32, #tpu.memory_space<vmem>>, vector<8x1xf32>
    %6 = vector.broadcast %5 : vector<8x1xf32> to vector<8x128xf32>
    %7 = arith.addf %4, %6 : vector<8x128xf32>
    %cst = arith.constant 0.000000e+00 : f32
    %8 = vector.broadcast %cst : f32 to vector<8x128xf32>
    %9 = arith.maximumf %7, %8 : vector<8x128xf32>
    %c0_6 = arith.constant 0 : index
    %c0_7 = arith.constant 0 : index
    %c0_8 = arith.constant 0 : index
    %10 = vector.load %arg5[%c0_6, %c0_7, %c0_8] : memref<1x8x128xf32, #tpu.memory_space<vmem>>, vector<1x8x128xf32>
    %11 = vector.shape_cast %10 : vector<1x8x128xf32> to vector<8x128xf32>
    %12 = vector.shape_cast %9 : vector<8x128xf32> to vector<1x8x128xf32>
    tpu.vector_store %arg5[%c0_6, %c0_7, %c0_8], %12 {strides = array<i32>} : memref<1x8x128xf32, #tpu.memory_space<vmem>>, vector<1x8x128xf32>,
    return
  }
  func.func @transform_0(%arg0: i32, %arg1: i32) -> (i32, i32, i32) {
    %c0_i32 = arith.constant 0 : i32
    %c0_i32_0 = arith.constant 0 : i32
    return %arg0, %c0_i32, %arg1 : i32, i32, i32
  }
  func.func @transform_1(%arg0: i32, %arg1: i32) -> (i32, i32) {
    %c0_i32 = arith.constant 0 : i32
    %c0_i32_0 = arith.constant 0 : i32
    %c0_i32_1 = arith.constant 0 : i32
    return %c0_i32, %c0_i32_0 : i32, i32
  }
  func.func @transform_2(%arg0: i32, %arg1: i32) -> (i32, i32) {
    %c0_i32 = arith.constant 0 : i32
    %c0_i32_0 = arith.constant 0 : i32
    %c0_i32_1 = arith.constant 0 : i32
    return %c0_i32, %c0_i32_0 : i32, i32
  }
  func.func @transform_3(%arg0: i32, %arg1: i32) -> (i32, i32, i32) {
    %c0_i32 = arith.constant 0 : i32
    %c0_i32_0 = arith.constant 0 : i32
    return %arg0, %c0_i32, %arg1 : i32, i32, i32
  }
}

</mosaic_0001>

<bundles_post_ra>
// kernel: basic_conv2d.3
= control target key start
LH: loop header
LB: loop body
LE: loop exit
PB: predicated region body
PF: predicated region fallthrough
CT: control target
= control target key end

     0   :  { %s419_s12 = smov 0   ;;  %s421_s13 = smov 0   ;;  %s476_s0 = inlined_call_operand.vmem [shape: f32[2,8,256], index: 0, kind: input, shape index: {}, may-alias: {0,3}]   ;;  %s477_s1 = inlined_call_operand.vmem [shape: f32[8,1], index: 1, kind: input, shape index: {}]   ;;  %s478_s2 = inlined_call_operand.vmem [shape: f32[8,1], index: 2, kind: input, shape index: {}]   ;;  %s479_s3 = inlined_call_operand.vmem [shape: f32[2,8,256], index: 3, kind: output, shape index: {}, may-alias: {0,3}]  }
   0x1   :  { %s423_s14 = smov 0   ;;  %s425_s15 = smov 0  }
   0x2   :  { %s427_s16 = smov 0  }
   0x3 LB: > { %s22_s17 = sadd.s32 1, %s388_s14  ;;  %s25_s18 = sadd.s32 1, %s392_s15  ;;  %s396_s16 = sphi %s427_s16, %s13_s16   ;;  %s392_s15 = sphi %s425_s15, %s483_s15   ;;  %s388_s14 = sphi %s423_s14, %s482_s14   ;;  %s384_s13 = sphi %s421_s13, %s481_s13   ;;  %s380_s12 = sphi %s419_s12, %s480_s12  }
   0x4   : > { %p23_p0 = scmp.ge.s32.totalorder %s22_s17, 2  ;;  %p309_p1 = scmp.ge.s32.totalorder %s396_s16, 1 }
   0x5   : > { %p156_p2 = scmp.lt.s32.totalorder %s396_s16, 5 }
   0x6   : > { %s485_s17 = smov (%p23_p0, %s22_s17), 0  ;;  %s487_s18 = smov (!%p23_p0, %s25_s18), %s392_s15 }
   0x7   : > { %p157_p3 = pnand %p309_p1, %p156_p2  ;;  %p27_p4 = scmp.ge.s32.totalorder %s487_s18, 2 }
   0x8   : > { %p186_p5 = scmp.lt.s32.totalorder (!%p157_p3), %s384_s13, 1  ;;  %p188_p6 = scmp.lt.s32.totalorder (!%p157_p3), %s380_s12, 1 }
   0x9   : > { %s489_s18 = smov (%p27_p4, %s487_s18), 0  ;;  %160 = sbr.rel (%p157_p3) target bundleno = 149 (0x95), region = 32 }
   0xe   : > { %v203_v0 = vld [vmem:[%s477_s1] sm:$0xff]  ;;  %v398_v1 = vmov 0   ;;  %s491_s13 = smov (!%p186_p5, %s384_s13), 1  ;;  %s493_s12 = smov (!%p188_p6, %s380_s12), 1 }
   0xf   : > { %357 = vset.pattern.permute.xlu0 %v398_v1  ;;  %v210_v2 = vld [vmem:[%s478_s2] sm:$0xff]  ;;  %s310_s23 = sshll.u32 %s491_s13, 1 }
  0x10   : > { %206 = vperm.xlu0 %357, %v203_v0   ;;  %s191_s24 = sadd.s32 %s310_s23, %s493_s12 }
  0x11   : > { %s311_s25 = sshll.u32 %s191_s24, 3 }
  0x12   : > { %s193_s28 = scalar_lea.vmem %s476_s0, %s311_s25  ;;  %s201_s4 = scalar_lea.vmem %s479_s3, %s311_s25 }
  0x13   : > { %v202_v4 = vld [vmem:[%s193_s28] sm:$0xff] }
  0x14   : > { %213 = vperm.xlu0 %357, %v210_v2  }
  0x8b   : > { %v207_v3 = vpop.permute.xlu0 %206 }
  0x8c   : > { %v209_v5 = vmul.f32 %v207_v3, %v202_v4 }
  0x8f   : > { %v214_v6 = vpop.permute.xlu0 %213 }
  0x90   : > { %v216_v7 = vadd.f32 %v214_v6, %v209_v5 }
  0x92   : > { %v217_v8 = vmax.f32 %v216_v7, 0.0 }
  0x94   : > { %218 = vst [vmem:[%s201_s4] sm:$0xff] %v217_v8 }
  0x95 PF: > { %s13_s16 = sadd.s32 1, %s396_s16   ;;  %s480_s12 = smov %s388_s14 }
  0x96   : > { %p10_p7 = scmp.ge.s32.totalorder %s13_s16, 6   ;;  %s481_s13 = smov %s392_s15 }
  0x97   : > { %s482_s14 = smov %s485_s17  ;;  %s483_s15 = smov %s489_s18 }
  0x98   :  { %12 = sbr.rel (!%p10_p7) target bundleno = 3 (0x3), region = 62 }

// kernel: basic_conv2d.2
= control target key start
LH: loop header
LB: loop body
LE: loop exit
PB: predicated region body
PF: predicated region fallthrough
CT: control target
= control target key end

     0   :  { %s751_s15 = smov 0   ;;  %s753_s16 = smov 0   ;;  %s853_s0 = inlined_call_operand.vmem [shape: bf16[8,48], index: 0, kind: input, shape index: {}]   ;;  %s854_s1 = inlined_call_operand.vmem [shape: bf16[2,48,256], index: 1, kind: input, shape index: {}]   ;;  %s855_s2 = inlined_call_operand.vmem [shape: f32[2,8,256], index: 2, kind: output, shape index: {0}]   ;;  %s856_s3 = inlined_call_operand.vmem [shape: f32[4,8,1], index: 3, kind: output, shape index: {1}]   ;;  %s857_s4 = inlined_call_operand.vmem [shape: f32[4,8,1], index: 4, kind: output, shape index: {2}]  }
   0x1   :  { %s755_s17 = smov 0   ;;  %s757_s18 = smov 0  }
   0x2   :  { %s759_s19 = smov 0   ;;  %s761_s20 = smov 0  }
   0x3   :  { %s763_s21 = smov 0  }
   0x4 LB: > { %s24_s22 = sadd.s32 1, %s714_s19  ;;  %s27_s23 = sadd.s32 1, %s718_s20  ;;  %s722_s21 = sphi %s763_s21, %s15_s21   ;;  %s718_s20 = sphi %s761_s20, %s863_s20   ;;  %s714_s19 = sphi %s759_s19, %s862_s19   ;;  %s710_s18 = sphi %s757_s18, %s861_s18   ;;  %s706_s17 = sphi %s755_s17, %s860_s17   ;;  %s702_s16 = sphi %s753_s16, %s859_s16   ;;  %s698_s15 = sphi %s751_s15, %s858_s15  }
   0x5   : > { %p25_p0 = scmp.ge.s32.totalorder %s24_s22, 2  ;;  %p64_p1 = scmp.ne.s32.totalorder %s702_s16, %s698_s15 }
   0x6   : > { %p65_p2 = scmp.eq.s32.totalorder %s722_s21, 0  ;;  %s57_s27 = sadd.s32 1, %s702_s16 }
   0x7   : > { %s865_s22 = smov (%p25_p0, %s24_s22), 0  ;;  %s867_s23 = smov (!%p25_p0, %s27_s23), %s718_s20 }
   0x8   : > { %p66_p3 = por %p65_p2, %p64_p1  ;;  %p29_p4 = scmp.ge.s32.totalorder %s867_s23, 2 }
   0x9   : > { %s53_s24 = ssub.s32 %s714_s19, %s865_s22  ;;  %p575_p6 = scmp.ge.s32.totalorder %s722_s21, 4 }
   0xa   : > { %s869_s23 = smov (%p29_p4, %s867_s23), 0 }
   0xb   : > { %s52_s25 = ssub.s32 %s718_s20, %s869_s23  ;;  %181 = sbr.rel (%p575_p6) target bundleno = 27 (0x1b), region = 20 }
   0xc   : > { %s54_s26 = sor.u32 %s53_s24, %s52_s25 }
   0xd   : > { %p55_p5 = scmp.eq.s32.totalorder %s54_s26, 0 }
   0xf   : > { %s802_s28 = scalar_select %p55_p5, %s702_s16, %s57_s27  }
  0x10   : > { %184 = sbr.rel (!%p66_p3) target bundleno = 27 (0x1b), region = 24  ;;  %s186_s29 = sand.u32 (%p66_p3), 1, %s702_s16  }
  0x11   : > { %s605_s30 = smul.u32 (%p66_p3), 12, %s718_s20 }
  0x12   : > { %s604_s5 = smul.u32 (%p66_p3), 24, %s186_s29 }
  0x13   : > { %s190_s6 = sadd.s32 (%p66_p3), %s714_s19, %s605_s30 }
  0x14   : > { %s576_s7 = sshll.u32 (%p66_p3), %s190_s6, 2  ;;  %s188_s11 = scalar_lea.vmem (%p66_p3), [#allocation2], %s604_s5 }
  0x15   : > { %s192_s10 = scalar_lea.vmem %s854_s1, %s576_s7 }
  0x16   : > { %v209_v0 = vld [vmem:[%s192_s10] sm:$0xf]  ;;  %v211_v1 = vld [vmem:[%s192_s10 + $0x8] sm:$0xf]  ;;  %v213_v2 = vld [vmem:[%s192_s10 + $0x10] sm:$0xf] }
  0x17   : > { %210 = vst [vmem:[%s188_s11] sm:$0xf] %v209_v0  ;;  %212 = vst [vmem:[%s188_s11 + $0x4] sm:$0xf] %v211_v1  ;;  %v215_v3 = vld [vmem:[%s192_s10 + $0x18] sm:$0xf] }
  0x18   : > { %214 = vst [vmem:[%s188_s11 + $0x8] sm:$0xf] %v213_v2  ;;  %v217_v4 = vld [vmem:[%s192_s10 + $0x20] sm:$0xf]  ;;  %v219_v5 = vld [vmem:[%s192_s10 + $0x28] sm:$0xf] }
  0x19   : > { %216 = vst [vmem:[%s188_s11 + $0xc] sm:$0xf] %v215_v3  ;;  %218 = vst [vmem:[%s188_s11 + $0x10] sm:$0xf] %v217_v4 }
  0x1a   : > { %220 = vst [vmem:[%s188_s11 + $0x14] sm:$0xf] %v219_v5 }
  0x1b PF: > { %p577_p7 = scmp.ge.s32.totalorder %s722_s21, 1  ;;  %p255_p8 = scmp.lt.s32.totalorder %s722_s21, 5 }
  0x1d   : > { %p256_p9 = pnand %p577_p7, %p255_p8 }
  0x1e   : > { %s262_s12 = sand.u32 (!%p256_p9), 1, %s698_s15   ;;  %p302_p10 = scmp.lt.s32.totalorder (!%p256_p9), %s710_s18, 1 }
  0x1f   : > { %259 = sbr.rel (%p256_p9) target bundleno = 385 (0x181), region = 65  ;;  %p304_p11 = scmp.lt.s32.totalorder (!%p256_p9), %s706_s17, 1 }
  0x20   : > { %s606_s13 = smul.u32 (!%p256_p9), 24, %s262_s12  ;;  %s580_s8 = sshll.u32 (!%p256_p9), %s710_s18, 1 }
  0x21   : > { %s311_s9 = sadd.s32 (!%p256_p9), %s706_s17, %s580_s8 }
  0x22   : > { %s264_s14 = scalar_lea.vmem (!%p256_p9), [#allocation2], %s606_s13  ;;  %p312_p12 = scmp.lt.s32.totalorder (!%p256_p9), %s311_s9, 3 }
  0x24   : > { %v724_v6 = vmov 0.0   ;;  %vm725_vm0 = vmmov 0   ;;  %v665_v7 = vld [vmem:[%s264_s14 + $0x10] sm:$0xff]   ;;  %v666_v8 = vld [vmem:[%s264_s14 + $0x8] sm:$0xff]   ;;  %v667_v9 = vld [vmem:[%s264_s14] sm:$0xff]   ;;  %vm352_vm1 = vcmask 392192  }
  0x25   : > { %594 = vmatprep.subr.bf16.mxu0 %v724_v6  ;;  %600 = vmatprep.mubr.msk.bf16.mxu0 %vm725_vm0, %v724_v6  ;;  %v327_v10 = vld [vmem:[%s853_s0] sm:$0xf]  ;;  %s303_s25 = scalar_select %p302_p10, %s710_s18, 1  ;;  %vm399_vm2 = vcmask 7168  }
  0x26   : > { %595 = vmatpush3.bf16.msra.mxu0 %v665_v7  ;;  %s305_s26 = scalar_select %p304_p11, %s706_s17, 1 }
  0x27   : > { %596 = vmatprep.subr.bf16.mxu0 %v724_v6  ;;  %s578_s27 = sshll.u32 %s303_s25, 1  ;;  %s871_s9 = smov (!%p312_p12, %s311_s9), 3 }
  0x28   : > { %s307_s29 = sadd.s32 %s578_s27, %s305_s26  ;;  %s581_s10 = sshll.u32 %s871_s9, 3 }
  0x29   : > { %s579_s30 = sshll.u32 %s307_s29, 3  ;;  %s315_s13 = scalar_lea.vmem %s856_s3, %s581_s10 }
  0x2a   : > { %597 = vmatpush3.bf16.msra.mxu0 %v666_v8  ;;  %s309_s7 = scalar_lea.vmem %s855_s2, %s579_s30  ;;  %s323_s15 = scalar_lea.vmem %s857_s4, %s581_s10 }
  0x2b   : > { %598 = vmatprep.subr.bf16.mxu0 %v724_v6 }
  0x2e   : > { %599 = vmatpush3.bf16.msra.mxu0 %v667_v9 }
  0x31   : > { %601 = vmatmul.mubr.msk.bf16.vlgmr.msra.gmra.mxu0 %vm352_vm1, %v327_v10 }
  0xf1   : > { %v390_v11 = vpop.f32.mrf.mxu0 }
  0xf2   : > { %396 = vst [vmem:[%s309_s7] sm:$0xff] %v390_v11  ;;  %397 = vadd.xlane.f32.xlu0 %v390_v11  ;;  %v401_v13 = vmul.f32 %v390_v11, %v390_v11 }
  0xf3   : > { %v602_v12 = vpop.f32.mrf.mxu0 }
  0xf5   : > { %v393_v14 = vpop.f32.mrf.mxu0 }
  0xf6   : > { %402 = vadd.xlane.f32.xlu0 %v401_v13 }
  0xf7   : > { %v603_v15 = vpop.f32.mrf.mxu0 }
 0x17b   : > { %v398_v16 = vpop.xlane.xlu0 %397 }
 0x17c   : > { %400 = vst.msk [vmem:[%s315_s13] sm:$0xff] %vm399_vm2, %v398_v16 }
 0x17f   : > { %v403_v17 = vpop.xlane.xlu0 %402 }
 0x180   : > { %404 = vst.msk [vmem:[%s323_s15] sm:$0xff] %vm399_vm2, %v403_v17 }
 0x181 PF: > { %s15_s21 = sadd.s32 1, %s722_s21   ;;  %s858_s15 = smov %s702_s16 }
 0x182   : > { %p12_p13 = scmp.ge.s32.totalorder %s15_s21, 6   ;;  %s859_s16 = smov %s802_s28 }
 0x183   : > { %s860_s17 = smov %s714_s19  ;;  %s861_s18 = smov %s718_s20 }
 0x184   : > { %s862_s19 = smov %s865_s22  ;;  %s863_s20 = smov %s869_s23 }
 0x185   :  { %14 = sbr.rel (!%p12_p13) target bundleno = 4 (0x4), region = 128 }

</bundles_post_ra>
